<compile_context>
chip_gen: v7x
topology: tpu7x:2x2x1
jax: 0.10.0
libtpu: 0.0.40
codegen_flags: <defaults>
</compile_context>

<pallas_src>
import functools

import jax
import jax.numpy as jnp
from jax.experimental import pallas as pl
from jax.experimental.pallas import tpu as pltpu


def _make_mlp_readout_kernel(num_layers):
    """Kernel for `num_layers` fused (1x1 conv -> ReLU) stages; last stage linear."""

    def kernel(*refs):
        x_ref = refs[0]
        o_ref = refs[-1]
        wb_refs = refs[1:-1]          # (w0, b0, w1, b1, ..., w_{L}, b_{L})
        cdt = x_ref.dtype

        y = x_ref[...]                # (C0, THW), spatial on lanes
        for l in range(num_layers):
            w_ref = wb_refs[2 * l]    # (C_{l+1}, C_l)
            b_ref = wb_refs[2 * l + 1]  # (C_{l+1}, 1) -> broadcasts over lanes
            y = jnp.dot(w_ref[...], y,
                        preferred_element_type=jnp.float32) + b_ref[...]
            if l < num_layers - 1:
                # ReLU on hidden layers only; cast back so the next MXU op
                # runs in the native (possibly bf16) dtype.
                y = jnp.maximum(y, 0.0).astype(cdt)

        o_ref[...] = y.astype(o_ref.dtype)

    return kernel


def mlp_readout_pallas(x_nchw, params, *, tm=2048):
    """Apply MLPReadout to NCHW input using a single fused Pallas TPU kernel.

    params = [(w0, b0), ..., (wL, bL)] with wl of shape (C_out_l, C_in_l)
    (PyTorch Conv2d k=1 layout, squeezed) and bl of shape (C_out_l, 1).
    """
    n, c0, h, w = x_nchw.shape
    num_layers = len(params)
    c_out = params[-1][0].shape[0]
    hw = h * w

    # NCHW -> (N, C, H*W): free reshape, no transpose, no pad.
    x3d = x_nchw.reshape(n, c0, hw)

    # Spatial tile: whole extent if small, else `tm` (a multiple of 128).
    # Pallas masks a partial last block, so no explicit padding is needed.
    thw = hw if hw <= tm else tm
    grid = (n, pl.cdiv(hw, thw))

    # Advisory cost for XLA's scheduler (kernel is HBM-bandwidth bound).
    itemsize = jnp.dtype(x_nchw.dtype).itemsize
    flops = 2 * n * hw * sum(int(wl.shape[0]) * int(wl.shape[1])
                             for wl, _ in params)
    param_bytes = sum(int(a.size) * jnp.dtype(a.dtype).itemsize
                      for pair in params for a in pair)
    bytes_accessed = n * hw * (c0 + c_out) * itemsize + param_bytes
    cost = pl.CostEstimate(flops=flops, transcendentals=0,
                           bytes_accessed=bytes_accessed)

    # Weight/bias specs: full-extent blocks, constant index map -> resident.
    wb_specs = []
    wb_args = []
    for wl, bl in params:
        wb_specs.append(pl.BlockSpec(wl.shape, lambda b, i: (0, 0)))
        wb_specs.append(pl.BlockSpec(bl.shape, lambda b, i: (0, 0)))
        wb_args.extend((wl, bl))

    out3d = pl.pallas_call(
        _make_mlp_readout_kernel(num_layers),
        out_shape=jax.ShapeDtypeStruct((n, c_out, hw), x_nchw.dtype),
        grid_spec=pltpu.PrefetchScalarGridSpec(
            num_scalar_prefetch=0,
            grid=grid,
            in_specs=[pl.BlockSpec((None, c0, thw), lambda b, i: (b, 0, i))]
                     + wb_specs,
            out_specs=pl.BlockSpec((None, c_out, thw), lambda b, i: (b, 0, i)),
        ),
        compiler_params=pltpu.CompilerParams(
            dimension_semantics=("parallel", "parallel")),
        cost_estimate=cost,
    )(x3d, *wb_args)

    # (N, C_out, H*W) -> NCHW: free reshape.
    return out3d.reshape(n, c_out, h, w)


def init_mlp_readout_params(key, input_dim, output_dim, L=2, dtype=jnp.float32):
    """Deterministic synthetic init matching MLPReadout.__init__ shapes.

    PyTorch stores Conv2d(k=1) weights as (C_out, C_in, 1, 1); we keep them as
    (C_out, C_in) matrices (the layout the transposed GEMM consumes) and the
    biases as (C_out, 1).
    """
    dims = [input_dim // (2 ** l) for l in range(L + 1)] + [output_dim]
    params = []
    for l in range(L + 1):
        c_in, c_out = dims[l], dims[l + 1]
        key, kw, kb = jax.random.split(key, 3)
        bound = 1.0 / (c_in ** 0.5)   # PyTorch default uniform bound for conv
        w = jax.random.uniform(kw, (c_out, c_in), dtype, -bound, bound)
        b = jax.random.uniform(kb, (c_out, 1), dtype, -bound, bound)
        params.append((w, b))
    return params


def mlp_readout_reference(x_nchw, params):
    """Plain-JAX reference (1x1 convs as channel matmuls), stays in NCHW."""
    y = x_nchw
    n_layers = len(params)
    for l, (w, b) in enumerate(params):
        y = jnp.einsum("oc,nchw->nohw", w, y) + b[:, 0][None, :, None, None]
        if l < n_layers - 1:
            y = jax.nn.relu(y)
    return y


if __name__ == "__main__":
    key = jax.random.PRNGKey(0)

    # Shapes consistent with the module: input_dim divisible by 2**L.
    batch, input_dim, hdim, wdim = 2, 32, 16, 16
    output_dim, L = 4, 2

    key, kx = jax.random.split(key)
    x = jax.random.normal(kx, (batch, input_dim, hdim, wdim), jnp.float32)
    params = init_mlp_readout_params(jax.random.PRNGKey(1), input_dim,
                                     output_dim, L=L)

    fn = jax.jit(functools.partial(mlp_readout_pallas, params=params))
    out = jax.block_until_ready(fn(x))
    ref = mlp_readout_reference(x, params)
    assert out.shape == (batch, output_dim, hdim, wdim), out.shape
    assert jnp.allclose(out, ref, atol=1e-5, rtol=1e-5), \
        float(jnp.max(jnp.abs(out - ref)))

    # Second check: larger spatial extent to exercise the multi-tile grid path.
    key, kx2 = jax.random.split(key)
    x2 = jax.random.normal(kx2, (batch, input_dim, 32, 32), jnp.float32)
    out2 = jax.block_until_ready(mlp_readout_pallas(x2, params, tm=256))
    ref2 = mlp_readout_reference(x2, params)
    assert out2.shape == (batch, output_dim, 32, 32), out2.shape
    assert jnp.allclose(out2, ref2, atol=1e-5, rtol=1e-5), \
        float(jnp.max(jnp.abs(out2 - ref2)))

    print("KERNEL_OK")
</pallas_src>

<mosaic_0001>
module attributes {stable_mosaic.version = 11 : i64} {
  func.func @kernel(%arg0: i32, %arg1: i32, %arg2: memref<1x32x256xf32, #tpu.memory_space<vmem>>, %arg3: memref<16x32xf32, #tpu.memory_space<vmem>>, %arg4: memref<16x1xf32, #tpu.memory_space<vmem>>, %arg5: memref<8x16xf32, #tpu.memory_space<vmem>>, %arg6: memref<8x1xf32, #tpu.memory_space<vmem>>, %arg7: memref<4x8xf32, #tpu.memory_space<vmem>>, %arg8: memref<4x1xf32, #tpu.memory_space<vmem>>, %arg9: memref<1x4x256xf32, #tpu.memory_space<vmem>>) attributes {dimension_semantics = [#tpu.dimension_semantics<parallel>, #tpu.dimension_semantics<parallel>], iteration_bounds = array<i64: 2, 1>, scalar_prefetch = 0 : i64, scratch_operands = 0 : i64, tpu.core_type = #tpu.core_type<tc>, window_params = [{transform_indices = @transform_0, window_bounds = array<i64: 1, 32, 256>}, {pipeline_mode = #tpu.pipeline_mode<synchronous>, transform_indices = @transform_1, window_bounds = array<i64: 16, 32>}, {pipeline_mode = #tpu.pipeline_mode<synchronous>, transform_indices = @transform_2, window_bounds = array<i64: 16, 1>}, {pipeline_mode = #tpu.pipeline_mode<synchronous>, transform_indices = @transform_3, window_bounds = array<i64: 8, 16>}, {pipeline_mode = #tpu.pipeline_mode<synchronous>, transform_indices = @transform_4, window_bounds = array<i64: 8, 1>}, {pipeline_mode = #tpu.pipeline_mode<synchronous>, transform_indices = @transform_5, window_bounds = array<i64: 4, 8>}, {pipeline_mode = #tpu.pipeline_mode<synchronous>, transform_indices = @transform_6, window_bounds = array<i64: 4, 1>}, {transform_indices = @transform_7, window_bounds = array<i64: 1, 4, 256>}]} {
    %c0 = arith.constant 0 : index
    %c0_0 = arith.constant 0 : index
    %c0_1 = arith.constant 0 : index
    %0 = vector.load %arg2[%c0, %c0_0, %c0_1] : memref<1x32x256xf32, #tpu.memory_space<vmem>>, vector<1x32x256xf32>
    %1 = vector.shape_cast %0 : vector<1x32x256xf32> to vector<32x256xf32>
    %c0_2 = arith.constant 0 : index
    %c0_3 = arith.constant 0 : index
    %2 = vector.load %arg3[%c0_2, %c0_3] : memref<16x32xf32, #tpu.memory_space<vmem>>, vector<16x32xf32>
    %cst = arith.constant dense<0.000000e+00> : vector<16x256xf32>
    %3 = tpu.matmul %2, %1, %cst {dimension_numbers = #tpu.dot_dimension_numbers<[1], [0], [0], [1], [0, 0, 1, 1], [], []>} : vector<16x32xf32>, vector<32x256xf32>, vector<16x256xf32> -> vector<16x256xf32>
    %c0_4 = arith.constant 0 : index
    %c0_5 = arith.constant 0 : index
    %4 = vector.load %arg4[%c0_4, %c0_5] : memref<16x1xf32, #tpu.memory_space<vmem>>, vector<16x1xf32>
    %5 = vector.broadcast %4 : vector<16x1xf32> to vector<16x256xf32>
    %6 = arith.addf %3, %5 : vector<16x256xf32>
    %cst_6 = arith.constant 0.000000e+00 : f32
    %7 = vector.broadcast %cst_6 : f32 to vector<16x256xf32>
    %8 = arith.maximumf %6, %7 : vector<16x256xf32>
    %c0_7 = arith.constant 0 : index
    %c0_8 = arith.constant 0 : index
    %9 = vector.load %arg5[%c0_7, %c0_8] : memref<8x16xf32, #tpu.memory_space<vmem>>, vector<8x16xf32>
    %cst_9 = arith.constant dense<0.000000e+00> : vector<8x256xf32>
    %10 = tpu.matmul %9, %8, %cst_9 {dimension_numbers = #tpu.dot_dimension_numbers<[1], [0], [0], [1], [0, 0, 1, 1], [], []>} : vector<8x16xf32>, vector<16x256xf32>, vector<8x256xf32> -> vector<8x256xf32>
    %c0_10 = arith.constant 0 : index
    %c0_11 = arith.constant 0 : index
    %11 = vector.load %arg6[%c0_10, %c0_11] : memref<8x1xf32, #tpu.memory_space<vmem>>, vector<8x1xf32>
    %12 = vector.broadcast %11 : vector<8x1xf32> to vector<8x256xf32>
    %13 = arith.addf %10, %12 : vector<8x256xf32>
    %cst_12 = arith.constant 0.000000e+00 : f32
    %14 = vector.broadcast %cst_12 : f32 to vector<8x256xf32>
    %15 = arith.maximumf %13, %14 : vector<8x256xf32>
    %c0_13 = arith.constant 0 : index
    %c0_14 = arith.constant 0 : index
    %16 = vector.load %arg7[%c0_13, %c0_14] : memref<4x8xf32, #tpu.memory_space<vmem>>, vector<4x8xf32>
    %cst_15 = arith.constant dense<0.000000e+00> : vector<4x256xf32>
    %17 = tpu.matmul %16, %15, %cst_15 {dimension_numbers = #tpu.dot_dimension_numbers<[1], [0], [0], [1], [0, 0, 1, 1], [], []>} : vector<4x8xf32>, vector<8x256xf32>, vector<4x256xf32> -> vector<4x256xf32>
    %c0_16 = arith.constant 0 : index
    %c0_17 = arith.constant 0 : index
    %18 = vector.load %arg8[%c0_16, %c0_17] : memref<4x1xf32, #tpu.memory_space<vmem>>, vector<4x1xf32>
    %19 = vector.broadcast %18 : vector<4x1xf32> to vector<4x256xf32>
    %20 = arith.addf %17, %19 : vector<4x256xf32>
    %c0_18 = arith.constant 0 : index
    %c0_19 = arith.constant 0 : index
    %c0_20 = arith.constant 0 : index
    %21 = vector.load %arg9[%c0_18, %c0_19, %c0_20] : memref<1x4x256xf32, #tpu.memory_space<vmem>>, vector<1x4x256xf32>
    %22 = vector.shape_cast %21 : vector<1x4x256xf32> to vector<4x256xf32>
    %23 = vector.shape_cast %20 : vector<4x256xf32> to vector<1x4x256xf32>
    tpu.vector_store %arg9[%c0_18, %c0_19, %c0_20], %23 {strides = array<i32>} : memref<1x4x256xf32, #tpu.memory_space<vmem>>, vector<1x4x256xf32>,
    return
  }
  func.func @transform_0(%arg0: i32, %arg1: i32) -> (i32, i32, i32) {
    %c0_i32 = arith.constant 0 : i32
    %c0_i32_0 = arith.constant 0 : i32
    return %arg0, %c0_i32, %arg1 : i32, i32, i32
  }
  func.func @transform_1(%arg0: i32, %arg1: i32) -> (i32, i32) {
    %c0_i32 = arith.constant 0 : i32
    %c0_i32_0 = arith.constant 0 : i32
    %c0_i32_1 = arith.constant 0 : i32
    return %c0_i32, %c0_i32_0 : i32, i32
  }
  func.func @transform_2(%arg0: i32, %arg1: i32) -> (i32, i32) {
    %c0_i32 = arith.constant 0 : i32
    %c0_i32_0 = arith.constant 0 : i32
    %c0_i32_1 = arith.constant 0 : i32
    return %c0_i32, %c0_i32_0 : i32, i32
  }
  func.func @transform_3(%arg0: i32, %arg1: i32) -> (i32, i32) {
    %c0_i32 = arith.constant 0 : i32
    %c0_i32_0 = arith.constant 0 : i32
    %c0_i32_1 = arith.constant 0 : i32
    return %c0_i32, %c0_i32_0 : i32, i32
  }
  func.func @transform_4(%arg0: i32, %arg1: i32) -> (i32, i32) {
    %c0_i32 = arith.constant 0 : i32
    %c0_i32_0 = arith.constant 0 : i32
    %c0_i32_1 = arith.constant 0 : i32
    return %c0_i32, %c0_i32_0 : i32, i32
  }
  func.func @transform_5(%arg0: i32, %arg1: i32) -> (i32, i32) {
    %c0_i32 = arith.constant 0 : i32
    %c0_i32_0 = arith.constant 0 : i32
    %c0_i32_1 = arith.constant 0 : i32
    return %c0_i32, %c0_i32_0 : i32, i32
  }
  func.func @transform_6(%arg0: i32, %arg1: i32) -> (i32, i32) {
    %c0_i32 = arith.constant 0 : i32
    %c0_i32_0 = arith.constant 0 : i32
    %c0_i32_1 = arith.constant 0 : i32
    return %c0_i32, %c0_i32_0 : i32, i32
  }
  func.func @transform_7(%arg0: i32, %arg1: i32) -> (i32, i32, i32) {
    %c0_i32 = arith.constant 0 : i32
    %c0_i32_0 = arith.constant 0 : i32
    return %arg0, %c0_i32, %arg1 : i32, i32, i32
  }
}

</mosaic_0001>

<bundles_post_ra>
// kernel: mlp_readout_pallas.1
= control target key start
LH: loop header
LB: loop body
LE: loop exit
PB: predicated region body
PF: predicated region fallthrough
CT: control target
= control target key end

     0   :  { %s809_s24 = smov 0   ;;  %s811_s25 = smov 0   ;;  %s870_s0 = inlined_call_operand.vmem [shape: f32[2,32,256], index: 0, kind: input, shape index: {}]   ;;  %s871_s1 = inlined_call_operand.vmem [shape: f32[16,32], index: 1, kind: input, shape index: {}]   ;;  %s872_s2 = inlined_call_operand.vmem [shape: f32[16,1], index: 2, kind: input, shape index: {}]   ;;  %s873_s3 = inlined_call_operand.vmem [shape: f32[8,16], index: 3, kind: input, shape index: {}]   ;;  %s874_s4 = inlined_call_operand.vmem [shape: f32[8,1], index: 4, kind: input, shape index: {}]   ;;  %s875_s5 = inlined_call_operand.vmem [shape: f32[4,8], index: 5, kind: input, shape index: {}]   ;;  %s876_s6 = inlined_call_operand.vmem [shape: f32[4,1], index: 6, kind: input, shape index: {}]   ;;  %s877_s7 = inlined_call_operand.vmem [shape: f32[2,4,256], index: 7, kind: output, shape index: {}]  }
   0x1   :  { %s813_s26 = smov 0  }
   0x2 LB: > { %s29_s27 = sadd.s32 1, %s761_s25  ;;  %p690_p0 = scmp.ge.s32.totalorder %s765_s26, 1  ;;  %s765_s26 = sphi %s813_s26, %s17_s26   ;;  %s761_s25 = sphi %s811_s25, %s879_s25   ;;  %s757_s24 = sphi %s809_s24, %s878_s24  }
   0x3   : > { %p31_p1 = scmp.ge.s32.totalorder %s29_s27, 2  ;;  %p258_p2 = scmp.lt.s32.totalorder %s765_s26, 3 }
   0x5   : > { %s881_s27 = smov (%p31_p1, %s29_s27), 0  ;;  %p259_p3 = pnand %p690_p0, %p258_p2 }
   0x6   : > { %p299_p4 = scmp.lt.s32.totalorder (!%p259_p3), %s757_s24, 1  ;;  %v767_v0 = vmov (!%p259_p3), 0.0   ;;  %v768_v1 = vmov (!%p259_p3), 0   ;;  %v328_v2 = vld [vmem:[%s872_s2] sm:$0xff] (!%p259_p3)  ;;  %v329_v3 = vld [vmem:[%s872_s2 + $0x8] sm:$0xff] (!%p259_p3)  ;;  %vm340_vm0 = vcmask (!%p259_p3), 261120  }
   0x7   : > { %262 = sbr.rel (%p259_p3) target bundleno = 692 (0x2b4), region = 48  ;;  %411 = vmatprep.mubr.f32.mxu0 (!%p259_p3), %v767_v0  ;;  %741 = vset.pattern.permute.xlu0 (!%p259_p3), %v768_v1  ;;  %v326_v16 = vld [vmem:[%s871_s1] sm:$0xff] (!%p259_p3)  ;;  %v327_v17 = vld [vmem:[%s871_s1 + $0x8] sm:$0xff] (!%p259_p3)  ;;  %vm435_vm1 = vcmask (!%p259_p3), 130048   ;;  %vm519_vm2 = vcmask (!%p259_p3), 64512  }
   0x8   : > { %332 = vperm.xlu0 (!%p259_p3), %741, %v328_v2   ;;  %503 = vmatprep.mubr.f32.mxu1 (!%p259_p3), %v767_v0  ;;  %v429_v18 = vld [vmem:[%s874_s4] sm:$0xff] (!%p259_p3) }
   0x9   : > { %742 = vset.pattern.permute.xlu1 (!%p259_p3), %v768_v1  ;;  %v513_v19 = vld [vmem:[%s876_s6] sm:$0xf] (!%p259_p3) }
   0xa   : > { %432 = vperm.xlu1 (!%p259_p3), %742, %v429_v18   ;;  %v428_v36 = vld [vmem:[%s873_s3] sm:$0xff] (!%p259_p3) }
   0xb   : > { %v512_v44 = vld [vmem:[%s875_s5] sm:$0xf] (!%p259_p3) }
   0xc   : > { %337 = vperm.xlu0 (!%p259_p3), %741, %v329_v3  }
   0xe   : > { %s883_s24 = smov (!%p299_p4, %s757_s24), 1  ;;  %516 = vperm.xlu1 %742, %v513_v19  }
   0xf   : > { %s701_s9 = sshll.u32 %s883_s24, 6  ;;  %s702_s29 = sshll.u32 %s883_s24, 3 }
  0x10   : > { %s306_s12 = scalar_lea.vmem %s870_s0, %s701_s9  ;;  %s316_s9 = scalar_lea.vmem %s877_s7, %s702_s29 }
  0x11   : > { %v319_v4 = vld [vmem:[%s306_s12 + $0x8] sm:$0xff]  ;;  %v321_v5 = vld [vmem:[%s306_s12 + $0x18] sm:$0xff]  ;;  %v318_v6 = vld [vmem:[%s306_s12] sm:$0xff] }
  0x12   : > { %v703_v7 = vpack.c.bf16 %v321_v5, %v319_v4  ;;  %v320_v8 = vld [vmem:[%s306_s12 + $0x10] sm:$0xff]  ;;  %v323_v9 = vld [vmem:[%s306_s12 + $0x28] sm:$0xff]  ;;  %v325_v10 = vld [vmem:[%s306_s12 + $0x38] sm:$0xff] }
  0x13   : > { %v705_v11 = vpack.c.bf16 %v320_v8, %v318_v6  ;;  %v707_v12 = vpack.c.bf16 %v325_v10, %v323_v9  ;;  %v322_v13 = vld [vmem:[%s306_s12 + $0x20] sm:$0xff]  ;;  %v324_v14 = vld [vmem:[%s306_s12 + $0x30] sm:$0xff] }
  0x14   : > { %704 = vmatprep.subr.bf16.mxu0 %v703_v7  ;;  %v709_v15 = vpack.c.bf16 %v324_v14, %v322_v13 }
  0x15   : > { %706 = vmatpush1.bf16.msra.mxu0 %v705_v11 }
  0x16   : > { %708 = vmatprep.subr.bf16.mxu0 %v707_v12 }
  0x19   : > { %710 = vmatpush1.bf16.msra.mxu0 %v709_v15 }
  0x1c   : > { %695 = vmatmul.mubr.msk.f32.vlgmr.msra.gmra.mrb[0].mxu0 %vm340_vm0, %v326_v16 }
  0x1d   : > { %417 = vmatprep.mubr.f32.mxu0 %v767_v0 }
  0x20   : > { %696 = vmatmul.mubr.msk.f32.gmra.mrb[2].mxu0 %vm340_vm0, %v327_v17 }
  0x87   : > { %v333_v20 = vpop.permute.xlu0 %332 }
  0x89   : > { %v433_v37 = vpop.permute.xlu1 %432 }
  0x8b   : > { %v338_v24 = vpop.permute.xlu0 %337 }
  0x8d   : > { %v517_v45 = vpop.permute.xlu1 %516 }
  0xef   : > { %v413_v21 = vpop.f32.mrb[0].mxu0 }
  0xf0   : > { %v415_v22 = vpop.f32.mrb[1].mxu0  ;;  %v414_v23 = vadd.f32 %v413_v21, %v333_v20 }
  0xf1   : > { %v416_v25 = vadd.f32 %v415_v22, %v333_v20 }
  0xf2   : > { %v424_v30 = vmax.f32 %v414_v23, 0.0 }
  0xf3   : > { %v419_v26 = vpop.f32.mrb[2].mxu0  ;;  %v425_v32 = vmax.f32 %v416_v25, 0.0 }
  0xf4   : > { %v420_v27 = vadd.f32 %v419_v26, %v338_v24  ;;  %v421_v28 = vpop.f32.mrb[3].mxu0 }
  0xf5   : > { %v422_v29 = vadd.f32 %v421_v28, %v338_v24 }
  0xf6   : > { %v426_v31 = vmax.f32 %v420_v27, 0.0 }
  0xf7   : > { %v427_v33 = vmax.f32 %v422_v29, 0.0 }
  0xf8   : > { %v713_v34 = vpack.c.bf16 %v426_v31, %v424_v30 }
  0xf9   : > { %v711_v35 = vpack.c.bf16 %v427_v33, %v425_v32 }
  0xfb   : > { %712 = vmatprep.subr.bf16.mxu1 %v711_v35 }
  0xfc   : > { %714 = vmatpush1.bf16.msra.mxu1 %v713_v34 }
  0xff   : > { %697 = vmatmul.mubr.msk.f32.vlgmr.msra.gmra.mrb[0].mxu1 %vm435_vm1, %v428_v36 }
 0x100   : > { %587 = vmatprep.mubr.f32.mxu1 %v767_v0 }
 0x1d2   : > { %v505_v38 = vpop.f32.mrb[0].mxu1 }
 0x1d3   : > { %v506_v39 = vadd.f32 %v505_v38, %v433_v37  ;;  %v507_v40 = vpop.f32.mrb[1].mxu1 }
 0x1d4   : > { %v508_v41 = vadd.f32 %v507_v40, %v433_v37 }
 0x1d5   : > { %v510_v43 = vmax.f32 %v506_v39, 0.0 }
 0x1d6   : > { %v511_v42 = vmax.f32 %v508_v41, 0.0 }
 0x1d8   : > { %523 = vmatprep.subr.mxu1 %v511_v42 }
 0x1d9   : > { %524 = vmatpush1.msra.mxu1 %v510_v43 }
 0x1da   : > { %698 = vmatmul.mubr.msk.f32.vlgmr.msra.gmra.mrb[2].mxu1 %vm519_vm2, %v512_v44 }
 0x2ad   : > { %v589_v46 = vpop.f32.mrb[2].mxu1 }
 0x2ae   : > { %v590_v47 = vadd.f32 %v589_v46, %v517_v45  ;;  %v591_v48 = vpop.f32.mrb[3].mxu1 }
 0x2af   : > { %v592_v49 = vadd.f32 %v591_v48, %v517_v45 }
 0x2b1   : > { %v596_v50 = vcombine.low %v590_v47, %v592_v49 }
 0x2b3   : > { %598 = vst [vmem:[%s316_s9] sm:$0xff] %v596_v50 }
 0x2b4 PF: > { %s17_s26 = sadd.s32 1, %s765_s26   ;;  %s878_s24 = smov %s761_s25 }
 0x2b5   : > { %p14_p5 = scmp.ge.s32.totalorder %s17_s26, 4   ;;  %s879_s25 = smov %s881_s27 }
 0x2b7   :  { %16 = sbr.rel (!%p14_p5) target bundleno = 2 (0x2), region = 78 }

</bundles_post_ra>
